<compile_context>
chip_gen: v6e
topology: v6e:2x2x1
jax: 0.10.0
libtpu: 0.0.40
codegen_flags: <defaults>
</compile_context>

<pallas_src>
import math

import jax
import jax.numpy as jnp
from jax import lax
from jax.experimental import pallas as pl
from jax.experimental.pallas import tpu as pltpu


def _gelu_exact(x):
    # PyTorch nn.GELU() default == exact erf formulation.
    return 0.5 * x * (1.0 + lax.erf(x * (1.0 / math.sqrt(2.0))))


def _round_up(v, m):
    return (v + m - 1) // m * m


# --------------------------------------------------------------------------
# Router kernel: gates = softmax(x @ Wr) per token tile.
# --------------------------------------------------------------------------
def router_kernel(x_ref, wr_ref, g_ref):
    logits = jnp.dot(x_ref[...], wr_ref[...],
                     preferred_element_type=jnp.float32)          # (TN, E)
    logits = logits - jnp.max(logits, axis=-1, keepdims=True)
    p = jnp.exp(logits)
    # Exact reciprocal to stay within the 1e-4 tolerance of the f32 reference.
    g_ref[...] = (p * pl.reciprocal(jnp.sum(p, axis=-1, keepdims=True),
                                    approx=False)).astype(g_ref.dtype)


# --------------------------------------------------------------------------
# FFN kernel: grid = (token_tiles, experts, mh_tiles).
# x / gates / output blocks depend only on the token-tile index, so they stay
# resident in VMEM across the (e, m) reduction axes; only one (H, TMH) W1 tile
# and one (TMH, H) W2 tile are streamed (double-buffered) per step.
# --------------------------------------------------------------------------
def dense_moe_ffn_kernel(x_ref, g_ref, w1_ref, b1_ref, w2_ref, b2_ref, o_ref):
    e = pl.program_id(1)
    m = pl.program_id(2)

    # Output block is resident across the sequential (e, m) axes: zero once,
    # accumulate directly (no separate accumulator scratch needed for f32 out).
    @pl.when(jnp.logical_and(e == 0, m == 0))
    def _():
        o_ref[...] = jnp.zeros_like(o_ref)

    x = x_ref[...]                                                # (TN, H)
    h = jnp.dot(x, w1_ref[...],
                preferred_element_type=jnp.float32) + b1_ref[...]  # (TN, TMH)
    h = _gelu_exact(h)

    # Partial contraction over this MH tile; b2 is added exactly once (m==0).
    y = jnp.dot(h, w2_ref[...], preferred_element_type=jnp.float32)  # (TN, H)
    y = y + (m == 0).astype(jnp.float32) * b2_ref[...]

    # Select gate column e (dynamic) without dynamic lane slicing.
    col = lax.broadcasted_iota(jnp.int32, g_ref.shape, 1)         # (TN, E)
    g = jnp.sum(jnp.where(col == e, g_ref[...], 0.0),
                axis=-1, keepdims=True)                           # (TN, 1)

    o_ref[...] += (y * g).astype(o_ref.dtype)


# --------------------------------------------------------------------------
# Wrapper.
# --------------------------------------------------------------------------
def dense_moe(x, wr, w1, b1, w2, b2, *, tile_tokens=None, tile_mh=512):
    B, T, H = x.shape
    E, _, MH = w1.shape
    N = B * T

    # Generation-aware VMEM capacity (v5e/v6e: 128 MiB, v7x: 64 MiB per TC).
    try:
        phys = int(pltpu.get_tpu_info().vmem_capacity_bytes)
    except Exception:
        phys = 64 << 20  # conservative fallback (v7x)
    vmem_cap = max((phys * 7) // 8, 32 << 20)   # leave headroom below physical

    # Token tile: large (MXU-friendly / amortizes ~0.35us per-step overhead),
    # sublane-aligned, clamped to N.  512 on 128-MiB chips (v5e/v6e), 256 v7x.
    if tile_tokens is None:
        tile_tokens = 512 if phys > (96 << 20) else 256
    tile = min(_round_up(tile_tokens, 8), _round_up(N, 8))
    # Keep >= 2 token tiles whenever possible so the "parallel" token axis can
    # shard across both TensorCores on v7x (instead of idling one core).
    if N >= 16:
        tile = min(tile, _round_up(-(-N // 2), 8))
    Np = _round_up(N, tile)
    n_tiles = Np // tile

    # MH tile (multiple of 128/256 for real sizes; full MH when it is small).
    if MH <= tile_mh:
        tmh, MHp = MH, MH
    else:
        tmh = tile_mh
        MHp = _round_up(MH, tmh)
    n_mh = MHp // tmh

    xf = x.reshape(N, H).astype(jnp.float32)
    if Np != N:
        xf = jnp.pad(xf, ((0, Np - N), (0, 0)))
    if MHp != MH:
        # Zero-padded hidden columns contribute exactly 0 (GELU(0)=0, W2 rows 0).
        w1 = jnp.pad(w1, ((0, 0), (0, 0), (0, MHp - MH)))
        b1 = jnp.pad(b1, ((0, 0), (0, 0), (0, MHp - MH)))
        w2 = jnp.pad(w2, ((0, 0), (0, MHp - MH), (0, 0)))

    # --- router: tiny separate pallas_call over token tiles ---
    gates = pl.pallas_call(
        router_kernel,
        out_shape=jax.ShapeDtypeStruct((Np, E), jnp.float32),
        grid_spec=pltpu.PrefetchScalarGridSpec(
            num_scalar_prefetch=0,
            grid=(n_tiles,),
            in_specs=[
                pl.BlockSpec((tile, H), lambda i: (i, 0)),
                pl.BlockSpec((H, E), lambda i: (0, 0)),
            ],
            out_specs=pl.BlockSpec((tile, E), lambda i: (i, 0)),
        ),
        compiler_params=pltpu.CompilerParams(
            dimension_semantics=("parallel",)),
    )(xf, wr)

    # VMEM footprint estimate (double-buffered tiles + resident blocks).
    est = 4 * (2 * tile * H            # x tile (double-buffered)
               + 2 * tile * E          # gates tile
               + 2 * tile * H          # resident output tile
               + 2 * (H * tmh + tmh)   # W1 + b1 tiles (double-buffered)
               + 2 * (tmh * H + H)     # W2 + b2 tiles (double-buffered)
               + 2 * tile * tmh)       # GELU intermediate + slack
    vmem_limit = int(min(max(2 * est, 32 << 20), vmem_cap))

    flops = 2 * Np * E * (H * MHp + MHp * H) + 2 * Np * H * E
    transcendentals = Np * E * MHp + Np * E
    bytes_accessed = 4 * (2 * Np * H + Np * E
                          + n_tiles * E * (H * MHp + MHp + MHp * H + H))

    out = pl.pallas_call(
        dense_moe_ffn_kernel,
        out_shape=jax.ShapeDtypeStruct((Np, H), jnp.float32),
        grid_spec=pltpu.PrefetchScalarGridSpec(
            num_scalar_prefetch=0,
            grid=(n_tiles, E, n_mh),
            in_specs=[
                pl.BlockSpec((tile, H), lambda i, e, m: (i, 0)),         # x
                pl.BlockSpec((tile, E), lambda i, e, m: (i, 0)),         # gates
                pl.BlockSpec((None, H, tmh), lambda i, e, m: (e, 0, m)),  # W1
                pl.BlockSpec((None, 1, tmh), lambda i, e, m: (e, 0, m)),  # b1
                pl.BlockSpec((None, tmh, H), lambda i, e, m: (e, m, 0)),  # W2
                pl.BlockSpec((None, 1, H), lambda i, e, m: (e, 0, 0)),    # b2
            ],
            out_specs=pl.BlockSpec((tile, H), lambda i, e, m: (i, 0)),
        ),
        compiler_params=pltpu.CompilerParams(
            # Token axis parallel (megacore); expert & MH axes MUST stay
            # sequential ("arbitrary") for the resident-output accumulation.
            dimension_semantics=("parallel", "arbitrary", "arbitrary"),
            vmem_limit_bytes=vmem_limit),
        cost_estimate=pl.CostEstimate(
            flops=flops,
            transcendentals=transcendentals,
            bytes_accessed=bytes_accessed),
    )(xf, gates, w1, b1, w2, b2)

    if Np != N:
        out = out[:N]
    return out.reshape(B, T, H).astype(x.dtype)


# --------------------------------------------------------------------------
# Pure-JAX reference (mirrors the PyTorch DenseMOE forward).
# --------------------------------------------------------------------------
def dense_moe_ref(x, wr, w1, b1, w2, b2):
    gate = jax.nn.softmax(jnp.einsum("bth,he->bte", x, wr), axis=-1)   # (B,T,E)
    h = jnp.einsum("bth,ehm->btem", x, w1) + b1[:, 0][None, None]      # (B,T,E,MH)
    h = 0.5 * h * (1.0 + lax.erf(h / math.sqrt(2.0)))
    y = jnp.einsum("btem,emh->bteh", h, w2) + b2[:, 0][None, None]     # (B,T,E,H)
    return jnp.sum(y * gate[..., None], axis=2)


if __name__ == "__main__":
    B, T, H = 2, 8, 32
    num_experts, mlp_multiplier = 4, 2
    MH = mlp_multiplier * H

    key = jax.random.PRNGKey(0)
    kx, kr, k1, kb1, k2, kb2 = jax.random.split(key, 6)
    x = jax.random.normal(kx, (B, T, H), dtype=jnp.float32)
    wr = jax.random.normal(kr, (H, num_experts), dtype=jnp.float32) * 0.1
    w1 = jax.random.normal(k1, (num_experts, H, MH), dtype=jnp.float32) * 0.1
    b1 = jax.random.normal(kb1, (num_experts, 1, MH), dtype=jnp.float32) * 0.05
    w2 = jax.random.normal(k2, (num_experts, MH, H), dtype=jnp.float32) * 0.1
    b2 = jax.random.normal(kb2, (num_experts, 1, H), dtype=jnp.float32) * 0.05

    out = dense_moe(x, wr, w1, b1, w2, b2)
    out = jax.block_until_ready(out)

    ref = dense_moe_ref(x, wr, w1, b1, w2, b2)
    assert out.shape == (B, T, H)
    assert jnp.allclose(out, ref, atol=1e-4, rtol=1e-4), \
        float(jnp.max(jnp.abs(out - ref)))
    print("KERNEL_OK")
</pallas_src>

<mosaic_0001>
module attributes {stable_mosaic.version = 11 : i64} {
  func.func @router_kernel(%arg0: i32, %arg1: memref<8x32xf32, #tpu.memory_space<vmem>>, %arg2: memref<32x4xf32, #tpu.memory_space<vmem>>, %arg3: memref<8x4xf32, #tpu.memory_space<vmem>>) attributes {dimension_semantics = [#tpu.dimension_semantics<parallel>], iteration_bounds = array<i64: 2>, scalar_prefetch = 0 : i64, scratch_operands = 0 : i64, tpu.core_type = #tpu.core_type<tc>, window_params = [{transform_indices = @transform_0, window_bounds = array<i64: 8, 32>}, {pipeline_mode = #tpu.pipeline_mode<synchronous>, transform_indices = @transform_1, window_bounds = array<i64: 32, 4>}, {transform_indices = @transform_2, window_bounds = array<i64: 8, 4>}]} {
    %c0 = arith.constant 0 : index
    %c0_0 = arith.constant 0 : index
    %0 = vector.load %arg1[%c0, %c0_0] : memref<8x32xf32, #tpu.memory_space<vmem>>, vector<8x32xf32>
    %c0_1 = arith.constant 0 : index
    %c0_2 = arith.constant 0 : index
    %1 = vector.load %arg2[%c0_1, %c0_2] : memref<32x4xf32, #tpu.memory_space<vmem>>, vector<32x4xf32>
    %cst = arith.constant dense<0.000000e+00> : vector<8x4xf32>
    %2 = tpu.matmul %0, %1, %cst {dimension_numbers = #tpu.dot_dimension_numbers<[1], [0], [0], [1], [0, 0, 1, 1], [], []>} : vector<8x32xf32>, vector<32x4xf32>, vector<8x4xf32> -> vector<8x4xf32>
    %cst_3 = arith.constant dense<0xFF800000> : vector<8xf32>
    %3 = vector.multi_reduction <maximumf>, %2, %cst_3 [1] : vector<8x4xf32> to vector<8xf32>
    %4 = vector.shape_cast %3 : vector<8xf32> to vector<8x1xf32>
    %5 = vector.broadcast %4 : vector<8x1xf32> to vector<8x4xf32>
    %6 = arith.subf %2, %5 : vector<8x4xf32>
    %7 = math.exp %6 : vector<8x4xf32>
    %cst_4 = arith.constant dense<0.000000e+00> : vector<8xf32>
    %8 = vector.multi_reduction <add>, %7, %cst_4 [1] : vector<8x4xf32> to vector<8xf32>
    %9 = vector.shape_cast %8 : vector<8xf32> to vector<8x1xf32>
    %10 = tpu.reciprocal %9 : vector<8x1xf32> -> vector<8x1xf32>
    %11 = vector.broadcast %10 : vector<8x1xf32> to vector<8x4xf32>
    %12 = arith.mulf %7, %11 : vector<8x4xf32>
    %c0_5 = arith.constant 0 : index
    %c0_6 = arith.constant 0 : index
    %13 = vector.load %arg3[%c0_5, %c0_6] : memref<8x4xf32, #tpu.memory_space<vmem>>, vector<8x4xf32>
    tpu.vector_store %arg3[%c0_5, %c0_6], %12 {strides = array<i32>} : memref<8x4xf32, #tpu.memory_space<vmem>>, vector<8x4xf32>,
    return
  }
  func.func @transform_0(%arg0: i32) -> (i32, i32) {
    %c0_i32 = arith.constant 0 : i32
    %c0_i32_0 = arith.constant 0 : i32
    return %arg0, %c0_i32 : i32, i32
  }
  func.func @transform_1(%arg0: i32) -> (i32, i32) {
    %c0_i32 = arith.constant 0 : i32
    %c0_i32_0 = arith.constant 0 : i32
    %c0_i32_1 = arith.constant 0 : i32
    return %c0_i32, %c0_i32_0 : i32, i32
  }
  func.func @transform_2(%arg0: i32) -> (i32, i32) {
    %c0_i32 = arith.constant 0 : i32
    %c0_i32_0 = arith.constant 0 : i32
    return %arg0, %c0_i32 : i32, i32
  }
}

</mosaic_0001>

<bundles_post_ra>
// kernel: tpu_custom_call.1
= control target key start
LH: loop header
LB: loop body
LE: loop exit
PB: predicated region body
PF: predicated region fallthrough
CT: control target
= control target key end

     0   :  { %s349_s9 = smov 0   ;;  %s384_s0 = inlined_call_operand.vmem [shape: f32[16,32], index: 0, kind: input, shape index: {}]   ;;  %s385_s1 = inlined_call_operand.vmem [shape: f32[32,4], index: 1, kind: input, shape index: {}]   ;;  %s386_s2 = inlined_call_operand.vmem [shape: f32[16,4], index: 2, kind: output, shape index: {}]  }
   0x1 LB: > { %s284_s10 = sadd.s32 4294967295, %s330_s9   ;;  %p288_p0 = scmp.ge.s32.totalorder %s330_s9, 1  ;;  %s330_s9 = sphi %s349_s9, %s12_s9  }
   0x2   : > { %p111_p1 = scmp.lt.s32.totalorder %s330_s9, 3 }
   0x4   : > { %p112_p2 = pnand %p288_p0, %p111_p1 }
   0x5   : > { %p131_p3 = scmp.lt.s32.totalorder (!%p112_p2), %s284_s10, 1 }
   0x6   : > { %115 = sbr.rel (%p112_p2) target bundleno = 526 (0x20e), region = 28 }
   0xb   : > { %v143_v0 = vld [vmem:[%s385_s1 + $0x18] sm:$0xff]  ;;  %v332_v1 = vmov 0.0   ;;  %v142_v2 = vld [vmem:[%s385_s1 + $0x10] sm:$0xff]  ;;  %vm333_vm0 = vmmov 0   ;;  %s388_s10 = smov (!%p131_p3, %s284_s10), 1  ;;  %v141_v3 = vld [vmem:[%s385_s1 + $0x8] sm:$0xff] }
   0xc   : > { %299 = vmatprep.subr.mxu0 %v332_v1  ;;  %307 = vmatprep.mubr.msk.f32.mxu0 %vm333_vm0, %v332_v1  ;;  %s289_s17 = sshll.u32 %s388_s10, 3  ;;  %v140_v4 = vld [vmem:[%s385_s1] sm:$0xff]  ;;  %vm144_vm1 = vcmask 261120   ;;  %vm218_vm2 = vcmask 31744  }
   0xd   : > { %300 = vmatpush3.msra.mxu0 %v143_v0  ;;  %s134_s22 = scalar_lea.vmem %s384_s0, %s289_s17  ;;  %s138_s25 = scalar_lea.vmem %s386_s2, %s289_s17 }
   0xe   : > { %301 = vmatprep.subr.mxu0 %v332_v1  ;;  %v139_v5 = vld [vmem:[%s134_s22] sm:$0xff] }
   0xf   : > { %302 = vmatpush3.msra.mxu0 %v142_v2 }
  0x10   : > { %303 = vmatprep.subr.mxu0 %v332_v1 }
  0x11   : > { %304 = vmatpush3.msra.mxu0 %v141_v3 }
  0x12   : > { %305 = vmatprep.subr.mxu0 %v332_v1 }
  0x13   : > { %306 = vmatpush3.msra.mxu0 %v140_v4 }
  0x14   : > { %308 = vmatmul.mubr.msk.f32.vlgmr.msra.gmra.mxu0 %vm144_vm1, %v139_v5 }
  0xd4   : > { %v214_v6 = vpop.f32.mrf.mxu0 }
  0xd5   : > { %v219_v7 = vsel %vm218_vm2, %v214_v6, -inf }
  0xd6   : > { %220 = vmax.xlane.f32.xlu0 %v219_v7  ;;  %v309_v8 = vpop.f32.mrf.mxu0 }
 0x15f   : > { %v221_v9 = vpop.xlane.xlu0 %220 }
 0x160   : > { %v222_v10 = vsub.f32 %v214_v6, %v221_v9 }
 0x162   : > { %v223_v11 = vmul.f32 1.442695, %v222_v10 }
 0x164   : > { %320 = vpow2.f32 %v223_v11 }
 0x171   : > { %v321_v12 = vpop.eup %320 }
 0x172   : > { %v225_v13 = vsel %vm218_vm2, %v321_v12, 0.0 }
 0x173   : > { %226 = vadd.xlane.f32.xlu0 %v225_v13 }
 0x1fc   : > { %v227_v14 = vpop.xlane.xlu0 %226 }
 0x1fd   : > { %322 = vrcp.f32 %v227_v14 }
 0x20a   : > { %v323_v15 = vpop.eup %322 }
 0x20b   : > { %v229_v16 = vmul.f32 %v323_v15, %v321_v12 }
 0x20d   : > { %230 = vst.msk [vmem:[%s138_s25] sm:$0xff] %vm218_vm2, %v229_v16 }
 0x20e PF: > { %s12_s9 = sadd.s32 1, %s330_s9  }
 0x20f   : > { %p9_p4 = scmp.ge.s32.totalorder %s12_s9, 4  }
 0x211   :  { %11 = sbr.rel (!%p9_p4) target bundleno = 1 (0x1), region = 58 }

</bundles_post_ra>
